<compile_context>
chip_gen: v6e
topology: v6e:2x2x1
jax: 0.10.0
libtpu: 0.0.40
codegen_flags: <defaults>
</compile_context>

<pallas_src>
import functools

import jax
import jax.numpy as jnp
from jax.experimental import pallas as pl
from jax.experimental.pallas import tpu as pltpu


_H0, _H1, _H2 = 24, 24, 8  # hidden widths of the three hidden layers


def _row_offsets(no_outputs):
    r0 = 0
    r1 = r0 + _H0          # 24
    r2 = r1 + _H1          # 48
    r3 = r2 + _H2          # 56
    total = r3 + no_outputs
    return (r0, r1, r2, r3), total


def _dqn_kernel(x_ref, w_ref, b_ref, o_ref, *, no_inputs, no_outputs):
    """4-layer MLP with batch on the lane axis. x_ref: (no_inputs, tile_b)."""
    (r0, r1, r2, r3), _ = _row_offsets(no_outputs)

    x = x_ref[...]                                           # (ni, tile_b)

    # layer 0: (24, ni) @ (ni, tile_b) + (24, 1)
    h = jnp.dot(w_ref[r0:r0 + _H0, 0:no_inputs], x,
                preferred_element_type=jnp.float32) + b_ref[r0:r0 + _H0, :]
    h = jnp.maximum(h, 0.0)

    # layer 1: (24, 24) @ (24, tile_b)
    h = jnp.dot(w_ref[r1:r1 + _H1, 0:_H0], h,
                preferred_element_type=jnp.float32) + b_ref[r1:r1 + _H1, :]
    h = jnp.maximum(h, 0.0)

    # layer 2: (8, 24) @ (24, tile_b)
    h = jnp.dot(w_ref[r2:r2 + _H2, 0:_H1], h,
                preferred_element_type=jnp.float32) + b_ref[r2:r2 + _H2, :]
    h = jnp.maximum(h, 0.0)

    # output layer: (no_outputs, 8) @ (8, tile_b)
    out = jnp.dot(w_ref[r3:r3 + no_outputs, 0:_H2], h,
                  preferred_element_type=jnp.float32) + b_ref[r3:r3 + no_outputs, :]
    o_ref[...] = out.astype(o_ref.dtype)


def _default_tile_b(batch):
    """Large lane-aligned tiles; >=2 grid steps for big batches (v7x: 2 TCs)."""
    if batch <= 256:
        return 128
    half = -(-batch // 2)                 # ceil(batch / 2)
    tile = -(-half // 128) * 128          # round up to lane multiple
    return min(tile, 1024)


@functools.partial(jax.jit, static_argnames=("no_inputs", "no_outputs", "tile_b"))
def deep_q_network_forward(state, w_slab, b_slab, *, no_inputs, no_outputs,
                           tile_b=None):
    """Runs the DeepQNetwork forward pass.

    state:  any shape reshapeable to (-1, no_inputs), like state.view(-1, ni).
    w_slab: packed weights, see pack_dqn_params.
    b_slab: packed biases (column), see pack_dqn_params.
    Returns (batch, no_outputs) float32 Q-values.
    """
    x = state.reshape(-1, no_inputs).astype(jnp.float32)
    batch = x.shape[0]

    if tile_b is None:
        tile_b = _default_tile_b(batch)
    tile_b = max(128, -(-tile_b // 128) * 128)       # lane-aligned

    padded_b = -(-batch // tile_b) * tile_b
    if padded_b != batch:
        x = jnp.pad(x, ((0, padded_b - batch), (0, 0)))

    # Batch on the lane axis: activations are (features, batch).
    x_t = x.T                                        # (no_inputs, padded_b)

    grid = (padded_b // tile_b,)
    kernel = functools.partial(_dqn_kernel,
                               no_inputs=no_inputs, no_outputs=no_outputs)

    out_t = pl.pallas_call(
        kernel,
        out_shape=jax.ShapeDtypeStruct((no_outputs, padded_b), jnp.float32),
        grid_spec=pltpu.PrefetchScalarGridSpec(
            num_scalar_prefetch=0,
            grid=grid,
            in_specs=[
                pl.BlockSpec((no_inputs, tile_b), lambda i: (0, i)),  # x tile
                pl.BlockSpec(w_slab.shape, lambda i: (0, 0)),         # resident
                pl.BlockSpec(b_slab.shape, lambda i: (0, 0)),         # resident
            ],
            out_specs=pl.BlockSpec((no_outputs, tile_b), lambda i: (0, i)),
        ),
        compiler_params=pltpu.CompilerParams(
            dimension_semantics=("parallel",)),
    )(x_t, w_slab, b_slab)

    return out_t[:, :batch].T


def init_dqn_params(key, no_inputs, no_outputs):
    """Per-layer (W, b) in PyTorch nn.Linear layout: W (out, in), b (out,)."""
    dims = [(no_inputs, _H0), (_H0, _H1), (_H1, _H2), (_H2, no_outputs)]
    layers = []
    for fan_in, fan_out in dims:
        key, kw, kb = jax.random.split(key, 3)
        bound = 1.0 / jnp.sqrt(jnp.float32(fan_in))
        W = jax.random.uniform(kw, (fan_out, fan_in), jnp.float32, -bound, bound)
        b = jax.random.uniform(kb, (fan_out,), jnp.float32, -bound, bound)
        layers.append((W, b))
    return layers


def pack_dqn_params(layers, no_inputs, no_outputs):
    """Packs the 4 (W, b) pairs into two small padded slabs for the kernel."""
    offsets, total = _row_offsets(no_outputs)
    rows = -(-total // 8) * 8                        # sublane-multiple rows
    cols = max(no_inputs, _H0, _H1, _H2)
    w_slab = jnp.zeros((rows, cols), jnp.float32)
    b_slab = jnp.zeros((rows, 1), jnp.float32)
    for (W, b), r in zip(layers, offsets):
        o, i = W.shape
        w_slab = w_slab.at[r:r + o, 0:i].set(W.astype(jnp.float32))
        b_slab = b_slab.at[r:r + o, 0].set(b.astype(jnp.float32))
    return w_slab, b_slab


def _reference_forward(state, layers, no_inputs):
    """Pure-JAX reference for correctness checking."""
    x = state.reshape(-1, no_inputs).astype(jnp.float32)
    for idx, (W, b) in enumerate(layers):
        x = x @ W.T + b
        if idx < len(layers) - 1:
            x = jnp.maximum(x, 0.0)
    return x


if __name__ == "__main__":
    key = jax.random.PRNGKey(0)

    # Small RL-style problem: no_inputs=4 (e.g. CartPole state), no_outputs=2.
    no_inputs, no_outputs = 4, 2

    k_params, k_s1, k_s2 = jax.random.split(key, 3)
    layers = init_dqn_params(k_params, no_inputs, no_outputs)
    w_slab, b_slab = pack_dqn_params(layers, no_inputs, no_outputs)

    # Case 1: tiny batch (single grid step).
    state = jax.random.normal(k_s1, (8, no_inputs), jnp.float32)
    q = deep_q_network_forward(state, w_slab, b_slab,
                               no_inputs=no_inputs, no_outputs=no_outputs)
    q = jax.block_until_ready(q)
    ref = _reference_forward(state, layers, no_inputs)
    assert q.shape == (8, no_outputs)
    assert jnp.allclose(q, ref, atol=1e-4, rtol=1e-4), "mismatch vs reference (batch=8)"

    # Case 2: batch not a multiple of 128 -> padding + 2 parallel grid steps.
    state2 = jax.random.normal(k_s2, (300, no_inputs), jnp.float32)
    q2 = deep_q_network_forward(state2, w_slab, b_slab,
                                no_inputs=no_inputs, no_outputs=no_outputs)
    q2 = jax.block_until_ready(q2)
    ref2 = _reference_forward(state2, layers, no_inputs)
    assert q2.shape == (300, no_outputs)
    assert jnp.allclose(q2, ref2, atol=1e-4, rtol=1e-4), "mismatch vs reference (batch=300)"

    print("KERNEL_OK")
</pallas_src>

<mosaic_0001>
module attributes {stable_mosaic.version = 11 : i64} {
  func.func @_dqn_kernel(%arg0: i32, %arg1: memref<4x128xf32, #tpu.memory_space<vmem>>, %arg2: memref<64x24xf32, #tpu.memory_space<vmem>>, %arg3: memref<64x1xf32, #tpu.memory_space<vmem>>, %arg4: memref<2x128xf32, #tpu.memory_space<vmem>>) attributes {dimension_semantics = [#tpu.dimension_semantics<parallel>], iteration_bounds = array<i64: 1>, scalar_prefetch = 0 : i64, scratch_operands = 0 : i64, tpu.core_type = #tpu.core_type<tc>, window_params = [{transform_indices = @transform_0, window_bounds = array<i64: 4, 128>}, {pipeline_mode = #tpu.pipeline_mode<synchronous>, transform_indices = @transform_1, window_bounds = array<i64: 64, 24>}, {pipeline_mode = #tpu.pipeline_mode<synchronous>, transform_indices = @transform_2, window_bounds = array<i64: 64, 1>}, {transform_indices = @transform_3, window_bounds = array<i64: 2, 128>}]} {
    %c0 = arith.constant 0 : index
    %c0_0 = arith.constant 0 : index
    %0 = vector.load %arg1[%c0, %c0_0] : memref<4x128xf32, #tpu.memory_space<vmem>>, vector<4x128xf32>
    %c0_1 = arith.constant 0 : index
    %c0_2 = arith.constant 0 : index
    %1 = vector.load %arg2[%c0_1, %c0_2] : memref<64x24xf32, #tpu.memory_space<vmem>>, vector<24x4xf32>
    %cst = arith.constant dense<0.000000e+00> : vector<24x128xf32>
    %2 = tpu.matmul %1, %0, %cst {dimension_numbers = #tpu.dot_dimension_numbers<[1], [0], [0], [1], [0, 0, 1, 1], [], []>} : vector<24x4xf32>, vector<4x128xf32>, vector<24x128xf32> -> vector<24x128xf32>
    %c0_3 = arith.constant 0 : index
    %c0_4 = arith.constant 0 : index
    %3 = vector.load %arg3[%c0_3, %c0_4] : memref<64x1xf32, #tpu.memory_space<vmem>>, vector<24x1xf32>
    %4 = vector.broadcast %3 : vector<24x1xf32> to vector<24x128xf32>
    %5 = arith.addf %2, %4 : vector<24x128xf32>
    %cst_5 = arith.constant 0.000000e+00 : f32
    %6 = vector.broadcast %cst_5 : f32 to vector<24x128xf32>
    %7 = arith.maximumf %5, %6 : vector<24x128xf32>
    %c24 = arith.constant 24 : index
    %c0_6 = arith.constant 0 : index
    %8 = vector.load %arg2[%c24, %c0_6] : memref<64x24xf32, #tpu.memory_space<vmem>>, vector<24x24xf32>
    %cst_7 = arith.constant dense<0.000000e+00> : vector<24x128xf32>
    %9 = tpu.matmul %8, %7, %cst_7 {dimension_numbers = #tpu.dot_dimension_numbers<[1], [0], [0], [1], [0, 0, 1, 1], [], []>} : vector<24x24xf32>, vector<24x128xf32>, vector<24x128xf32> -> vector<24x128xf32>
    %c24_8 = arith.constant 24 : index
    %c0_9 = arith.constant 0 : index
    %10 = vector.load %arg3[%c24_8, %c0_9] : memref<64x1xf32, #tpu.memory_space<vmem>>, vector<24x1xf32>
    %11 = vector.broadcast %10 : vector<24x1xf32> to vector<24x128xf32>
    %12 = arith.addf %9, %11 : vector<24x128xf32>
    %cst_10 = arith.constant 0.000000e+00 : f32
    %13 = vector.broadcast %cst_10 : f32 to vector<24x128xf32>
    %14 = arith.maximumf %12, %13 : vector<24x128xf32>
    %c48 = arith.constant 48 : index
    %c0_11 = arith.constant 0 : index
    %15 = vector.load %arg2[%c48, %c0_11] : memref<64x24xf32, #tpu.memory_space<vmem>>, vector<8x24xf32>
    %cst_12 = arith.constant dense<0.000000e+00> : vector<8x128xf32>
    %16 = tpu.matmul %15, %14, %cst_12 {dimension_numbers = #tpu.dot_dimension_numbers<[1], [0], [0], [1], [0, 0, 1, 1], [], []>} : vector<8x24xf32>, vector<24x128xf32>, vector<8x128xf32> -> vector<8x128xf32>
    %c48_13 = arith.constant 48 : index
    %c0_14 = arith.constant 0 : index
    %17 = vector.load %arg3[%c48_13, %c0_14] : memref<64x1xf32, #tpu.memory_space<vmem>>, vector<8x1xf32>
    %18 = vector.broadcast %17 : vector<8x1xf32> to vector<8x128xf32>
    %19 = arith.addf %16, %18 : vector<8x128xf32>
    %cst_15 = arith.constant 0.000000e+00 : f32
    %20 = vector.broadcast %cst_15 : f32 to vector<8x128xf32>
    %21 = arith.maximumf %19, %20 : vector<8x128xf32>
    %c56 = arith.constant 56 : index
    %c0_16 = arith.constant 0 : index
    %22 = vector.load %arg2[%c56, %c0_16] : memref<64x24xf32, #tpu.memory_space<vmem>>, vector<2x8xf32>
    %cst_17 = arith.constant dense<0.000000e+00> : vector<2x128xf32>
    %23 = tpu.matmul %22, %21, %cst_17 {dimension_numbers = #tpu.dot_dimension_numbers<[1], [0], [0], [1], [0, 0, 1, 1], [], []>} : vector<2x8xf32>, vector<8x128xf32>, vector<2x128xf32> -> vector<2x128xf32>
    %c56_18 = arith.constant 56 : index
    %c0_19 = arith.constant 0 : index
    %24 = vector.load %arg3[%c56_18, %c0_19] : memref<64x1xf32, #tpu.memory_space<vmem>>, vector<2x1xf32>
    %25 = vector.broadcast %24 : vector<2x1xf32> to vector<2x128xf32>
    %26 = arith.addf %23, %25 : vector<2x128xf32>
    %c0_20 = arith.constant 0 : index
    %c0_21 = arith.constant 0 : index
    %27 = vector.load %arg4[%c0_20, %c0_21] : memref<2x128xf32, #tpu.memory_space<vmem>>, vector<2x128xf32>
    tpu.vector_store %arg4[%c0_20, %c0_21], %26 {strides = array<i32>} : memref<2x128xf32, #tpu.memory_space<vmem>>, vector<2x128xf32>,
    return
  }
  func.func @transform_0(%arg0: i32) -> (i32, i32) {
    %c0_i32 = arith.constant 0 : i32
    %c0_i32_0 = arith.constant 0 : i32
    return %c0_i32, %arg0 : i32, i32
  }
  func.func @transform_1(%arg0: i32) -> (i32, i32) {
    %c0_i32 = arith.constant 0 : i32
    %c0_i32_0 = arith.constant 0 : i32
    %c0_i32_1 = arith.constant 0 : i32
    return %c0_i32, %c0_i32_0 : i32, i32
  }
  func.func @transform_2(%arg0: i32) -> (i32, i32) {
    %c0_i32 = arith.constant 0 : i32
    %c0_i32_0 = arith.constant 0 : i32
    %c0_i32_1 = arith.constant 0 : i32
    return %c0_i32, %c0_i32_0 : i32, i32
  }
  func.func @transform_3(%arg0: i32) -> (i32, i32) {
    %c0_i32 = arith.constant 0 : i32
    %c0_i32_0 = arith.constant 0 : i32
    return %c0_i32, %arg0 : i32, i32
  }
}

</mosaic_0001>

<bundles_post_ra>
// kernel: deep_q_network_forward.1
= control target key start
LH: loop header
LB: loop body
LE: loop exit
PB: predicated region body
PF: predicated region fallthrough
CT: control target
= control target key end

     0   :  { %vm46_vm0 = vcmask 1043456   ;;  %v486_v0 = vmov 0.0   ;;  %vm36_vm1 = vcmask 31744   ;;  %vm487_vm2 = vmmov 0   ;;  %s595_s0 = inlined_call_operand.vmem [shape: f32[4,128], index: 0, kind: input, shape index: {}]   ;;  %s596_s1 = inlined_call_operand.vmem [shape: f32[64,24], index: 1, kind: input, shape index: {}]   ;;  %s597_s2 = inlined_call_operand.vmem [shape: f32[64,1], index: 2, kind: input, shape index: {}]   ;;  %s598_s3 = inlined_call_operand.vmem [shape: f32[2,128], index: 3, kind: output, shape index: {}]  }
   0x1   :  { %439 = vmatprep.subr.mxu0 %v486_v0  ;;  %479 = vmatprep.subr.mxu1 %v486_v0  ;;  %v14_v1 = vld [vmem:[%s595_s0] sm:$0xf]  ;;  %v17_v3 = vld [vmem:[%s596_s1 + $0x10] sm:$0xff]  ;;  %v16_v6 = vld [vmem:[%s596_s1 + $0x8] sm:$0xff]  ;;  %v488_v7 = vmov 0   ;;  %vm154_vm3 = vcmask 195584  }
   0x2   :  { %v15_v2 = vld [vmem:[%s596_s1] sm:$0xff]  ;;  %440 = vmatpush3.msk.msra.mxu0 %vm46_vm0, %v14_v1  ;;  %480 = vmatpush3.msk.msra.mxu1 %vm46_vm0, %v14_v1  ;;  %v20_v4 = vld [vmem:[%s597_s2 + $0x10] sm:$0xff]  ;;  %v19_v8 = vld [vmem:[%s597_s2 + $0x8] sm:$0xff]  ;;  %vm335_vm4 = vcmask 64512  }
   0x3   :  { %441 = vmatprep.mubr.msk.f32.mxu0 %vm487_vm2, %v486_v0  ;;  %447 = vmatprep.mubr.msk.f32.mxu1 %vm487_vm2, %v486_v0  ;;  %v18_v5 = vld [vmem:[%s597_s2] sm:$0xff]  ;;  %v138_v9 = vld [vmem:[%s597_s2 + $0x28] sm:$0xff]  ;;  %v136_v11 = vld [vmem:[%s597_s2 + $0x18] sm:$0xff] }
   0x4   :  { %442 = vmatmul.mubr.msk.f32.vlgmr.msra.gmra.mxu0 %vm36_vm1, %v15_v2  ;;  %448 = vmatmul.mubr.msk.f32.vlgmr.msra.gmra.mxu1 %vm36_vm1, %v17_v3  ;;  %v137_v10 = vld [vmem:[%s597_s2 + $0x20] sm:$0xff]  ;;  %v248_v12 = vld [vmem:[%s597_s2 + $0x30] sm:$0xff]  ;;  %v329_v13 = vld [vmem:[%s597_s2 + $0x38] sm:$0x3] }
   0x5   :  { %444 = vmatprep.mubr.msk.f32.mxu0 %vm487_vm2, %v486_v0  ;;  %484 = vset.pattern.permute.xlu0 %v488_v7  ;;  %v133_v29 = vld [vmem:[%s596_s1 + $0x18] sm:$0xff]  ;;  %v134_v30 = vld [vmem:[%s596_s1 + $0x20] sm:$0xff]  ;;  %v135_v31 = vld [vmem:[%s596_s1 + $0x28] sm:$0xff] }
   0x6   :  { %33 = vperm.xlu0 %484, %v20_v4   ;;  %485 = vset.pattern.permute.xlu1 %v488_v7  ;;  %v247_v47 = vld [vmem:[%s596_s1 + $0x30] sm:$0xff]  ;;  %v328_v53 = vld [vmem:[%s596_s1 + $0x38] sm:$0x3] }
   0x7   :  { %23 = vperm.xlu1 %485, %v18_v5   ;;  %450 = vmatprep.subr.mxu1 %v486_v0 }
   0x8   :  { %445 = vmatmul.mubr.msk.f32.gmra.mxu0 %vm36_vm1, %v16_v6  ;;  %456 = vmatprep.mubr.msk.f32.mxu1 %vm487_vm2, %v486_v0 }
   0x9   :  { %465 = vmatprep.subr.mxu0 %v486_v0  ;;  %471 = vmatprep.mubr.msk.f32.mxu0 %vm487_vm2, %v486_v0 }
   0xa   :  { %28 = vperm.xlu0 %484, %v19_v8  }
   0xb   :  { %151 = vperm.xlu1 %485, %v138_v9  }
   0xe   :  { %146 = vperm.xlu0 %484, %v137_v10  }
   0xf   :  { %141 = vperm.xlu1 %485, %v136_v11  }
  0x12   :  { %251 = vperm.xlu0 %484, %v248_v12  }
  0x13   :  { %332 = vperm.xlu1 %485, %v329_v13  }
  0x81   :  { %v34_v14 = vpop.permute.xlu0 %33 }
  0x82   :  { %v24_v20 = vpop.permute.xlu1 %23 }
  0x85   :  { %v29_v22 = vpop.permute.xlu0 %28 }
  0x86   :  { %v152_v34 = vpop.permute.xlu1 %151 }
  0x89   :  { %v147_v37 = vpop.permute.xlu0 %146 }
  0x8a   :  { %v142_v41 = vpop.permute.xlu1 %141 }
  0x8d   :  { %v252_v48 = vpop.permute.xlu0 %251 }
  0x8e   :  { %v333_v54 = vpop.permute.xlu1 %332 }
  0xc4   :  { %v116_v15 = vpop.f32.mrf.mxu0  ;;  %v126_v16 = vpop.f32.mrf.mxu1 }
  0xc5   :  { %v127_v17 = vadd.f32 %v126_v16, %v34_v14  ;;  %v117_v24 = vadd.f32 %v116_v15, %v24_v20 }
  0xc6   :  { %v443_v18 = vpop.f32.mrf.mxu0  ;;  %v449_v19 = vpop.f32.mrf.mxu1 }
  0xc7   :  { %v132_v21 = vmax.f32 %v127_v17, 0.0  ;;  %v130_v28 = vmax.f32 %v117_v24, 0.0 }
  0xc8   :  { %v121_v23 = vpop.f32.mrf.mxu0 }
  0xc9   :  { %v122_v25 = vadd.f32 %v121_v23, %v29_v22  ;;  %451 = vmatpush3.msra.mxu1 %v132_v21 }
  0xca   :  { %v446_v26 = vpop.f32.mrf.mxu0  ;;  %452 = vmatprep.subr.mxu1 %v486_v0 }
  0xcb   :  { %v131_v27 = vmax.f32 %v122_v25, 0.0 }
  0xcd   :  { %453 = vmatpush3.msra.mxu1 %v131_v27 }
  0xce   :  { %454 = vmatprep.subr.mxu1 %v486_v0 }
  0xcf   :  { %455 = vmatpush3.msra.mxu1 %v130_v28 }
  0xd0   :  { %457 = vmatmul.mubr.msk.f32.vlgmr.msra.gmra.mxu1 %vm154_vm3, %v133_v29 }
  0xd1   :  { %459 = vmatprep.mubr.msk.f32.mxu1 %vm487_vm2, %v486_v0 }
  0xd4   :  { %460 = vmatmul.mubr.msk.f32.gmra.mxu1 %vm154_vm3, %v134_v30 }
  0xd5   :  { %462 = vmatprep.mubr.msk.f32.mxu1 %vm487_vm2, %v486_v0 }
  0xd8   :  { %463 = vmatmul.mubr.msk.f32.gmra.mxu1 %vm154_vm3, %v135_v31 }
 0x190   :  { %v230_v32 = vpop.f32.mrf.mxu1 }
 0x191   :  { %v231_v43 = vadd.f32 %v230_v32, %v142_v41 }
 0x192   :  { %v458_v33 = vpop.f32.mrf.mxu1 }
 0x193   :  { %v244_v46 = vmax.f32 %v231_v43, 0.0 }
 0x194   :  { %v235_v35 = vpop.f32.mrf.mxu1 }
 0x195   :  { %v236_v39 = vadd.f32 %v235_v35, %v147_v37 }
 0x196   :  { %v461_v36 = vpop.f32.mrf.mxu1 }
 0x197   :  { %v245_v45 = vmax.f32 %v236_v39, 0.0 }
 0x198   :  { %v240_v38 = vpop.f32.mrf.mxu1 }
 0x199   :  { %v241_v40 = vadd.f32 %v240_v38, %v152_v34 }
 0x19a   :  { %v464_v42 = vpop.f32.mrf.mxu1 }
 0x19b   :  { %v246_v44 = vmax.f32 %v241_v40, 0.0 }
 0x19d   :  { %466 = vmatpush3.msra.mxu0 %v246_v44 }
 0x19e   :  { %467 = vmatprep.subr.mxu0 %v486_v0 }
 0x19f   :  { %468 = vmatpush3.msra.mxu0 %v245_v45 }
 0x1a0   :  { %469 = vmatprep.subr.mxu0 %v486_v0 }
 0x1a1   :  { %470 = vmatpush3.msra.mxu0 %v244_v46 }
 0x1a2   :  { %472 = vmatmul.mubr.msk.f32.vlgmr.msra.gmra.mxu0 %vm154_vm3, %v247_v47  ;;  %474 = vmatprep.subr.mxu0 %v486_v0 }
 0x1a3   :  { %476 = vmatprep.mubr.msk.f32.mxu0 %vm487_vm2, %v486_v0 }
 0x262   :  { %v323_v49 = vpop.f32.mrf.mxu0 }
 0x263   :  { %v324_v50 = vadd.f32 %v323_v49, %v252_v48 }
 0x264   :  { %v473_v51 = vpop.f32.mrf.mxu0 }
 0x265   :  { %v327_v52 = vmax.f32 %v324_v50, 0.0 }
 0x267   :  { %475 = vmatpush3.msra.mxu0 %v327_v52 }
 0x268   :  { %477 = vmatmul.mubr.msk.f32.vlgmr.msra.gmra.mxu0 %vm335_vm4, %v328_v53 }
 0x328   :  { %v405_v55 = vpop.f32.mrf.mxu0 }
 0x329   :  { %v406_v56 = vadd.f32 %v405_v55, %v333_v54 }
 0x32a   :  { %v478_v57 = vpop.f32.mrf.mxu0 }
 0x32b   :  { %409 = vst [vmem:[%s598_s3] sm:$0x3] %v406_v56 }

</bundles_post_ra>
